<compile_context>
chip_gen: v5e
topology: v5e:2x2
jax: 0.10.0
libtpu: 0.0.40
codegen_flags: <defaults>
</compile_context>

<pallas_src>
import functools

import jax
import jax.numpy as jnp
from jax import lax
from jax.experimental import pallas as pl
from jax.experimental.pallas import tpu as pltpu

_INV_SQRT2 = 0.7071067811865475


def _round_up(x, m):
    return ((x + m - 1) // m) * m


def _gelu_exact(x):
    # PyTorch nn.GELU() default is the exact erf formulation.
    return 0.5 * x * (1.0 + lax.erf(x * _INV_SQRT2))


def _ln_epilogue(x_f32, acc, b2, g, beta, o_ref):
    """residual + LayerNorm(eps=1e-5, biased variance), fused moments."""
    r = x_f32 + (acc + b2)
    inv_h = 1.0 / r.shape[-1]
    mean = jnp.sum(r, axis=-1, keepdims=True) * inv_h
    mean_sq = jnp.sum(r * r, axis=-1, keepdims=True) * inv_h
    var = mean_sq - mean * mean
    inv = lax.rsqrt(var + 1e-5)
    o_ref[...] = ((r - mean) * inv * g + beta).astype(o_ref.dtype)


def reasoning_kernel(x_ref, w1_ref, b1_ref, w2_ref, b2_ref, g_ref, beta_ref,
                     o_ref, *scratch, nk):
    """One (tm, H) row tile; the 2H hidden dim is chunked on grid axis 1 (nk)."""
    k = pl.program_id(1)

    if nk == 1:
        xb = x_ref[...].astype(jnp.bfloat16)
    else:
        xb_ref, = scratch

        @pl.when(k == 0)
        def _():
            xb_ref[...] = x_ref[...].astype(jnp.bfloat16)

        xb = xb_ref[...]

    # ---- chunk of reasoning MLP: Linear(H, tk) -> GELU ----
    h = jnp.dot(xb, w1_ref[...], preferred_element_type=jnp.float32)
    h = _gelu_exact(h + b1_ref[...])
    # ---- this chunk's contribution of Linear(tk, H) ----
    contrib = jnp.dot(h.astype(jnp.bfloat16), w2_ref[...],
                      preferred_element_type=jnp.float32)

    if nk == 1:
        _ln_epilogue(x_ref[...], contrib, b2_ref[...], g_ref[...],
                     beta_ref[...], o_ref)
    else:
        @pl.when(k == 0)
        def _():
            o_ref[...] = contrib                 # first chunk: plain write

        @pl.when(jnp.logical_and(k > 0, k < nk - 1))
        def _():
            o_ref[...] += contrib                # middle chunks: accumulate

        @pl.when(k == nk - 1)
        def _():
            _ln_epilogue(x_ref[...], o_ref[...] + contrib, b2_ref[...],
                         g_ref[...], beta_ref[...], o_ref)


def _vmem_budget():
    """~80% of physical VMEM: ~102 MiB on v5e/v6e (128 MiB), ~51 MiB on v7x."""
    cap = 64 << 20
    try:
        cap = int(pltpu.get_tpu_info().vmem_capacity_bytes)
    except Exception:
        pass
    return int(cap * 0.8)


def _footprint_bytes(tm, tk, H, H2, nk):
    """Conservative VMEM estimate for the chosen tiles (double-buffered)."""
    f32, bf16 = 4, 2
    total = 0
    total += 2 * tm * H * f32                 # x tile (double buffered)
    total += 2 * tm * H * f32                 # out tile (double buffered)
    total += 2 * H * tk * bf16                # W1 chunk (double buffered)
    total += 2 * tk * H * bf16                # W2 chunk (double buffered)
    total += 2 * 8 * (tk + 3 * H) * f32       # 1-row params, sublane padded
    if nk > 1:
        total += tm * H * bf16                # xb scratch
    # in-kernel temporaries: h f32 + gelu temps, bf16 h, epilogue temps
    total += 3 * tm * tk * f32 + tm * tk * bf16 + 3 * tm * H * f32
    total += 2 << 20                          # compiler internal scratch slack
    return total


def _select_tiles(M, H, budget, tm_hint):
    H2 = 2 * H
    tm_max = _round_up(M, 8)
    if M > 8:
        # at least two row tiles so both v7x TensorCores get work
        tm_max = min(tm_max, _round_up((M + 1) // 2, 8))
    tm_cands = sorted(
        {min(t, tm_max) for t in
         (tm_hint, 1024, 768, 512, 384, 256, 192, 128, 64, 32, 16, 8)},
        reverse=True)
    tk_cands = [t for t in (4096, 2048, 1024, 512, 256, 128)
                if t < H2 and H2 % t == 0]

    # Pass 1: weights fully VMEM-resident (single 2H step -> weights hit HBM
    # exactly once, no accumulator read-modify-write).
    tm_floor = min(64, tm_max)
    for tm in tm_cands:
        if tm < tm_floor:
            break
        if _footprint_bytes(tm, H2, H, H2, 1) <= budget:
            return tm, H2
    # Pass 2: stream weight chunks; biggest row tile first (weight reuse).
    for tm in tm_cands:
        for tk in tk_cands:
            if _footprint_bytes(tm, tk, H, H2, H2 // tk) <= budget:
                return tm, tk
    # Fallback: smallest tiles (extreme H; may still exceed the budget).
    return tm_cands[-1], (tk_cands[-1] if tk_cands else H2)


def prepare_params(params):
    """One-time (outside jit): bf16 weights + 2-D f32 biases / LN params."""
    w1, b1, w2, b2, gamma, beta = params
    return (w1.astype(jnp.bfloat16),
            b1.reshape(1, -1).astype(jnp.float32),
            w2.astype(jnp.bfloat16),
            b2.reshape(1, -1).astype(jnp.float32),
            gamma.reshape(1, -1).astype(jnp.float32),
            beta.reshape(1, -1).astype(jnp.float32))


@functools.partial(jax.jit, static_argnames=("tm_hint",))
def reasoning_layer(hidden_states, prepared, *, tm_hint=512):
    """hidden_states: (B, S, H) float32. Returns (B, S, H)."""
    B, S, H = hidden_states.shape
    M = B * S
    H2 = 2 * H
    w1_bf, b1_r, w2_bf, b2_r, g_r, be_r = prepared

    budget = _vmem_budget()
    tm, tk = _select_tiles(M, H, budget, tm_hint)
    nk = H2 // tk
    m_pad = _round_up(M, tm)

    x2d = hidden_states.reshape(M, H).astype(jnp.float32)
    if m_pad != M:
        x2d = jnp.pad(x2d, ((0, m_pad - M), (0, 0)))

    grid = (m_pad // tm, nk)
    scratch = [] if nk == 1 else [pltpu.VMEM((tm, H), jnp.bfloat16)]

    out = pl.pallas_call(
        functools.partial(reasoning_kernel, nk=nk),
        out_shape=jax.ShapeDtypeStruct((m_pad, H), jnp.float32),
        grid_spec=pltpu.PrefetchScalarGridSpec(
            num_scalar_prefetch=0,
            grid=grid,
            in_specs=[
                pl.BlockSpec((tm, H), lambda i, k: (i, 0)),   # x tile (resident over k)
                pl.BlockSpec((H, tk), lambda i, k: (0, k)),   # W1 chunk (bf16)
                pl.BlockSpec((1, tk), lambda i, k: (0, k)),   # b1 chunk
                pl.BlockSpec((tk, H), lambda i, k: (k, 0)),   # W2 chunk (bf16)
                pl.BlockSpec((1, H), lambda i, k: (0, 0)),    # b2
                pl.BlockSpec((1, H), lambda i, k: (0, 0)),    # LN gamma
                pl.BlockSpec((1, H), lambda i, k: (0, 0)),    # LN beta
            ],
            out_specs=pl.BlockSpec((tm, H), lambda i, k: (i, 0)),
            scratch_shapes=scratch,
        ),
        compiler_params=pltpu.CompilerParams(
            dimension_semantics=("parallel", "arbitrary"),
            vmem_limit_bytes=budget),
    )(x2d, w1_bf, b1_r, w2_bf, b2_r, g_r, be_r)

    if m_pad != M:
        out = out[:M]
    return out.reshape(B, S, H).astype(hidden_states.dtype)


def init_params(key, hidden_dim):
    """Deterministic init mirroring the module's parameter shapes."""
    H, H2 = hidden_dim, 2 * hidden_dim
    k1, k2, k3, k4 = jax.random.split(key, 4)
    # PyTorch Linear default init: U(-1/sqrt(fan_in), 1/sqrt(fan_in)).
    lim1 = 1.0 / jnp.sqrt(H)
    lim2 = 1.0 / jnp.sqrt(H2)
    w1 = jax.random.uniform(k1, (H, H2), jnp.float32, -lim1, lim1)   # (in, out)
    b1 = jax.random.uniform(k2, (H2,), jnp.float32, -lim1, lim1)
    w2 = jax.random.uniform(k3, (H2, H), jnp.float32, -lim2, lim2)
    b2 = jax.random.uniform(k4, (H,), jnp.float32, -lim2, lim2)
    gamma = jnp.ones((H,), jnp.float32)
    beta = jnp.zeros((H,), jnp.float32)
    return w1, b1, w2, b2, gamma, beta


def reference(hidden_states, params):
    """Matches the kernel's numerics: bf16 matmul operands, f32 accumulation."""
    w1, b1, w2, b2, gamma, beta = params
    xb = hidden_states.astype(jnp.bfloat16)
    h = jnp.dot(xb, w1.astype(jnp.bfloat16),
                preferred_element_type=jnp.float32) + b1
    h = 0.5 * h * (1.0 + lax.erf(h * _INV_SQRT2))
    y = jnp.dot(h.astype(jnp.bfloat16), w2.astype(jnp.bfloat16),
                preferred_element_type=jnp.float32) + b2
    r = hidden_states + y
    mean = jnp.mean(r, axis=-1, keepdims=True)
    var = jnp.mean((r - mean) ** 2, axis=-1, keepdims=True)
    return (r - mean) / jnp.sqrt(var + 1e-5) * gamma + beta


if __name__ == "__main__":
    key = jax.random.PRNGKey(0)
    kx, kp, kx2 = jax.random.split(key, 3)

    # Small shape consistent with the module.
    B, S, H = 2, 8, 32
    x = jax.random.normal(kx, (B, S, H), jnp.float32)
    params = init_params(kp, H)
    prepared = prepare_params(params)   # one-time bf16 weight cast, outside jit

    out = jax.block_until_ready(reasoning_layer(x, prepared))
    ref = reference(x, params)
    assert out.shape == (B, S, H)
    assert jnp.allclose(out, ref, atol=2e-3, rtol=2e-3), float(
        jnp.max(jnp.abs(out - ref)))

    # Second case exercising the ragged-M padding path.
    B2, S2 = 3, 5
    x2 = jax.random.normal(kx2, (B2, S2, H), jnp.float32)
    out2 = jax.block_until_ready(reasoning_layer(x2, prepared))
    ref2 = reference(x2, params)
    assert out2.shape == (B2, S2, H)
    assert jnp.allclose(out2, ref2, atol=2e-3, rtol=2e-3), float(
        jnp.max(jnp.abs(out2 - ref2)))

    print("KERNEL_OK")
</pallas_src>

<mosaic_0001>
module attributes {stable_mosaic.version = 11 : i64} {
  func.func @reasoning_kernel(%arg0: i32, %arg1: i32, %arg2: memref<8x32xf32, #tpu.memory_space<vmem>>, %arg3: memref<32x64xbf16, #tpu.memory_space<vmem>>, %arg4: memref<1x64xf32, #tpu.memory_space<vmem>>, %arg5: memref<64x32xbf16, #tpu.memory_space<vmem>>, %arg6: memref<1x32xf32, #tpu.memory_space<vmem>>, %arg7: memref<1x32xf32, #tpu.memory_space<vmem>>, %arg8: memref<1x32xf32, #tpu.memory_space<vmem>>, %arg9: memref<8x32xf32, #tpu.memory_space<vmem>>) attributes {dimension_semantics = [#tpu.dimension_semantics<parallel>, #tpu.dimension_semantics<arbitrary>], iteration_bounds = array<i64: 2, 1>, scalar_prefetch = 0 : i64, scratch_operands = 0 : i64, tpu.core_type = #tpu.core_type<tc>, window_params = [{transform_indices = @transform_0, window_bounds = array<i64: 8, 32>}, {transform_indices = @transform_1, window_bounds = array<i64: 32, 64>}, {transform_indices = @transform_2, window_bounds = array<i64: 1, 64>}, {transform_indices = @transform_3, window_bounds = array<i64: 64, 32>}, {pipeline_mode = #tpu.pipeline_mode<synchronous>, transform_indices = @transform_4, window_bounds = array<i64: 1, 32>}, {pipeline_mode = #tpu.pipeline_mode<synchronous>, transform_indices = @transform_5, window_bounds = array<i64: 1, 32>}, {pipeline_mode = #tpu.pipeline_mode<synchronous>, transform_indices = @transform_6, window_bounds = array<i64: 1, 32>}, {transform_indices = @transform_7, window_bounds = array<i64: 8, 32>}]} {
    %c0 = arith.constant 0 : index
    %c0_0 = arith.constant 0 : index
    %0 = vector.load %arg2[%c0, %c0_0] : memref<8x32xf32, #tpu.memory_space<vmem>>, vector<8x32xf32>
    %1 = arith.truncf %0 : vector<8x32xf32> to vector<8x32xbf16>
    %c0_1 = arith.constant 0 : index
    %c0_2 = arith.constant 0 : index
    %2 = vector.load %arg3[%c0_1, %c0_2] : memref<32x64xbf16, #tpu.memory_space<vmem>>, vector<32x64xbf16>
    %cst = arith.constant dense<0.000000e+00> : vector<8x64xf32>
    %3 = tpu.matmul %1, %2, %cst {dimension_numbers = #tpu.dot_dimension_numbers<[1], [0], [0], [1], [0, 0, 1, 1], [], []>} : vector<8x32xbf16>, vector<32x64xbf16>, vector<8x64xf32> -> vector<8x64xf32>
    %c0_3 = arith.constant 0 : index
    %c0_4 = arith.constant 0 : index
    %4 = vector.load %arg4[%c0_3, %c0_4] : memref<1x64xf32, #tpu.memory_space<vmem>>, vector<1x64xf32>
    %5 = vector.broadcast %4 : vector<1x64xf32> to vector<8x64xf32>
    %6 = arith.addf %3, %5 : vector<8x64xf32>
    %cst_5 = arith.constant 5.000000e-01 : f32
    %7 = vector.broadcast %cst_5 : f32 to vector<8x64xf32>
    %8 = arith.mulf %7, %6 : vector<8x64xf32>
    %cst_6 = arith.constant 0.707106769 : f32
    %9 = vector.broadcast %cst_6 : f32 to vector<8x64xf32>
    %10 = arith.mulf %6, %9 : vector<8x64xf32>
    %11 = math.erf %10 : vector<8x64xf32>
    %cst_7 = arith.constant 1.000000e+00 : f32
    %12 = vector.broadcast %cst_7 : f32 to vector<8x64xf32>
    %13 = arith.addf %12, %11 : vector<8x64xf32>
    %14 = arith.mulf %8, %13 : vector<8x64xf32>
    %15 = arith.truncf %14 : vector<8x64xf32> to vector<8x64xbf16>
    %c0_8 = arith.constant 0 : index
    %c0_9 = arith.constant 0 : index
    %16 = vector.load %arg5[%c0_8, %c0_9] : memref<64x32xbf16, #tpu.memory_space<vmem>>, vector<64x32xbf16>
    %cst_10 = arith.constant dense<0.000000e+00> : vector<8x32xf32>
    %17 = tpu.matmul %15, %16, %cst_10 {dimension_numbers = #tpu.dot_dimension_numbers<[1], [0], [0], [1], [0, 0, 1, 1], [], []>} : vector<8x64xbf16>, vector<64x32xbf16>, vector<8x32xf32> -> vector<8x32xf32>
    %c0_11 = arith.constant 0 : index
    %c0_12 = arith.constant 0 : index
    %18 = vector.load %arg2[%c0_11, %c0_12] : memref<8x32xf32, #tpu.memory_space<vmem>>, vector<8x32xf32>
    %c0_13 = arith.constant 0 : index
    %c0_14 = arith.constant 0 : index
    %19 = vector.load %arg6[%c0_13, %c0_14] : memref<1x32xf32, #tpu.memory_space<vmem>>, vector<1x32xf32>
    %c0_15 = arith.constant 0 : index
    %c0_16 = arith.constant 0 : index
    %20 = vector.load %arg7[%c0_15, %c0_16] : memref<1x32xf32, #tpu.memory_space<vmem>>, vector<1x32xf32>
    %c0_17 = arith.constant 0 : index
    %c0_18 = arith.constant 0 : index
    %21 = vector.load %arg8[%c0_17, %c0_18] : memref<1x32xf32, #tpu.memory_space<vmem>>, vector<1x32xf32>
    %22 = vector.broadcast %19 : vector<1x32xf32> to vector<8x32xf32>
    %23 = arith.addf %17, %22 : vector<8x32xf32>
    %24 = arith.addf %18, %23 : vector<8x32xf32>
    %cst_19 = arith.constant dense<0.000000e+00> : vector<8xf32>
    %25 = vector.multi_reduction <add>, %24, %cst_19 [1] : vector<8x32xf32> to vector<8xf32>
    %26 = vector.shape_cast %25 : vector<8xf32> to vector<8x1xf32>
    %cst_20 = arith.constant 3.125000e-02 : f32
    %27 = vector.broadcast %cst_20 : f32 to vector<8x1xf32>
    %28 = arith.mulf %26, %27 : vector<8x1xf32>
    %29 = arith.mulf %24, %24 : vector<8x32xf32>
    %cst_21 = arith.constant dense<0.000000e+00> : vector<8xf32>
    %30 = vector.multi_reduction <add>, %29, %cst_21 [1] : vector<8x32xf32> to vector<8xf32>
    %31 = vector.shape_cast %30 : vector<8xf32> to vector<8x1xf32>
    %cst_22 = arith.constant 3.125000e-02 : f32
    %32 = vector.broadcast %cst_22 : f32 to vector<8x1xf32>
    %33 = arith.mulf %31, %32 : vector<8x1xf32>
    %34 = arith.mulf %28, %28 : vector<8x1xf32>
    %35 = arith.subf %33, %34 : vector<8x1xf32>
    %cst_23 = arith.constant 9.99999974E-6 : f32
    %36 = vector.broadcast %cst_23 : f32 to vector<8x1xf32>
    %37 = arith.addf %35, %36 : vector<8x1xf32>
    %38 = math.rsqrt %37 : vector<8x1xf32>
    %39 = vector.broadcast %28 : vector<8x1xf32> to vector<8x32xf32>
    %40 = arith.subf %24, %39 : vector<8x32xf32>
    %41 = vector.broadcast %38 : vector<8x1xf32> to vector<8x32xf32>
    %42 = arith.mulf %40, %41 : vector<8x32xf32>
    %43 = vector.broadcast %20 : vector<1x32xf32> to vector<8x32xf32>
    %44 = arith.mulf %42, %43 : vector<8x32xf32>
    %45 = vector.broadcast %21 : vector<1x32xf32> to vector<8x32xf32>
    %46 = arith.addf %44, %45 : vector<8x32xf32>
    %c0_24 = arith.constant 0 : index
    %c0_25 = arith.constant 0 : index
    %47 = vector.load %arg9[%c0_24, %c0_25] : memref<8x32xf32, #tpu.memory_space<vmem>>, vector<8x32xf32>
    tpu.vector_store %arg9[%c0_24, %c0_25], %46 {strides = array<i32>} : memref<8x32xf32, #tpu.memory_space<vmem>>, vector<8x32xf32>,
    return
  }
  func.func @transform_0(%arg0: i32, %arg1: i32) -> (i32, i32) {
    %c0_i32 = arith.constant 0 : i32
    %c0_i32_0 = arith.constant 0 : i32
    return %arg0, %c0_i32 : i32, i32
  }
  func.func @transform_1(%arg0: i32, %arg1: i32) -> (i32, i32) {
    %c0_i32 = arith.constant 0 : i32
    %c0_i32_0 = arith.constant 0 : i32
    return %c0_i32, %arg1 : i32, i32
  }
  func.func @transform_2(%arg0: i32, %arg1: i32) -> (i32, i32) {
    %c0_i32 = arith.constant 0 : i32
    %c0_i32_0 = arith.constant 0 : i32
    return %c0_i32, %arg1 : i32, i32
  }
  func.func @transform_3(%arg0: i32, %arg1: i32) -> (i32, i32) {
    %c0_i32 = arith.constant 0 : i32
    %c0_i32_0 = arith.constant 0 : i32
    return %arg1, %c0_i32 : i32, i32
  }
  func.func @transform_4(%arg0: i32, %arg1: i32) -> (i32, i32) {
    %c0_i32 = arith.constant 0 : i32
    %c0_i32_0 = arith.constant 0 : i32
    %c0_i32_1 = arith.constant 0 : i32
    return %c0_i32, %c0_i32_0 : i32, i32
  }
  func.func @transform_5(%arg0: i32, %arg1: i32) -> (i32, i32) {
    %c0_i32 = arith.constant 0 : i32
    %c0_i32_0 = arith.constant 0 : i32
    %c0_i32_1 = arith.constant 0 : i32
    return %c0_i32, %c0_i32_0 : i32, i32
  }
  func.func @transform_6(%arg0: i32, %arg1: i32) -> (i32, i32) {
    %c0_i32 = arith.constant 0 : i32
    %c0_i32_0 = arith.constant 0 : i32
    %c0_i32_1 = arith.constant 0 : i32
    return %c0_i32, %c0_i32_0 : i32, i32
  }
  func.func @transform_7(%arg0: i32, %arg1: i32) -> (i32, i32) {
    %c0_i32 = arith.constant 0 : i32
    %c0_i32_0 = arith.constant 0 : i32
    return %arg0, %c0_i32 : i32, i32
  }
}

</mosaic_0001>

<bundles_post_ra>
// kernel: reasoning_layer.1
= control target key start
LH: loop header
LB: loop body
LE: loop exit
PB: predicated region body
PF: predicated region fallthrough
CT: control target
= control target key end

     0   :  { %12 = vsyncpa [#allocation3], 0  ;;  %s1004_s0 = inlined_call_operand.vmem [shape: f32[16,32], index: 0, kind: input, shape index: {}]   ;;  %s1005_s1 = inlined_call_operand.vmem [shape: bf16[32,64], index: 1, kind: input, shape index: {}]   ;;  %s1006_s2 = inlined_call_operand.vmem [shape: f32[1,64], index: 2, kind: input, shape index: {}]   ;;  %s1007_s3 = inlined_call_operand.vmem [shape: bf16[64,32], index: 3, kind: input, shape index: {}]   ;;  %s1008_s4 = inlined_call_operand.vmem [shape: f32[1,32], index: 4, kind: input, shape index: {}]   ;;  %s1009_s5 = inlined_call_operand.vmem [shape: f32[1,32], index: 5, kind: input, shape index: {}]   ;;  %s1010_s6 = inlined_call_operand.vmem [shape: f32[1,32], index: 6, kind: input, shape index: {}]   ;;  %s1011_s7 = inlined_call_operand.hbm [shape: f32[16,32], index: 7, kind: output, shape index: {}]  }
   0x1   :  { %14 = vsyncpa [#allocation3 + $0x1], 0  ;;  %s868_s24 = smov 0   ;;  %s870_s25 = smov 0  }
   0x2   :  { %s872_s26 = smov 0   ;;  %s874_s27 = smov 0  }
   0x3   :  { %s876_s28 = smov 0   ;;  %s878_s29 = smov 0  }
   0x4 LB: > { %s638_s30 = sadd.s32 4294967295, %s826_s29   ;;  %s639_s8 = sadd.s32 4294967294, %s826_s29   ;;  %s826_s29 = sphi %s878_s29, %s20_s29   ;;  %s822_s28 = sphi %s876_s28, %s1018_s28   ;;  %s818_s27 = sphi %s874_s27, %s1017_s27   ;;  %s814_s26 = sphi %s872_s26, %s1016_s26   ;;  %s810_s25 = sphi %s870_s25, %s1015_s25   ;;  %s806_s24 = sphi %s868_s24, %s1014_s24  }
   0x5   : > { %s32_s9 = sadd.s32 1, %s822_s28  ;;  %s206_s10 = sadd.s32 1, %s814_s26 }
   0x6   : > { %p34_p0 = scmp.ge.s32.totalorder %s32_s9, 2  ;;  %p216_p1 = scmp.ne.s32.totalorder %s814_s26, %s810_s25 }
   0x7   : > { %p217_p2 = scmp.eq.s32.totalorder %s638_s30, 1  ;;  %p222_p3 = scmp.ne.s32.totalorder %s810_s25, %s806_s24 }
   0x8   : > { %s1020_s9 = smov (%p34_p0, %s32_s9), 0  ;;  %p223_p5 = scmp.eq.s32.totalorder %s639_s8, 1 }
   0x9   : > { %p908_p4 = por %p217_p2, %p216_p1  ;;  %s203_s12 = ssub.s32 %s822_s28, %s1020_s9 }
   0xa   : > { %p645_p6 = scmp.ge.s32.totalorder %s826_s29, 1  ;;  %p204_p7 = scmp.eq.s32.totalorder %s203_s12, 0 }
   0xb   : > { %p915_p8 = por %p223_p5, %p222_p3  ;;  %p279_p9 = scmp.lt.s32.totalorder %s826_s29, 3 }
   0xc   : > { %s921_s14 = scalar_select %p204_p7, %s814_s26, %s206_s10  }
   0xd   : > { %p280_p10 = pnand %p645_p6, %p279_p9 }
   0xe   : > { %p322_p11 = scmp.lt.s32.totalorder (!%p280_p10), %s818_s27, 1  ;;  %s676_s8 = sshll.u32 (!%p280_p10), %s818_s27, 3 }
   0xf   : > { %283 = sbr.rel (%p280_p10) target bundleno = 497 (0x1f1), region = 48  ;;  %s524_s17 = scalar_lea.hbm (!%p280_p10), %s1011_s7, %s676_s8 }
  0x10   : > { %s528_s21 = sshll.u32 (!%p280_p10), %s524_s17, 4  ;;  %s529_s21 = int_to_ptr.hbm [resolvable:$true] %s528_s21 }
  0x11   : > { %s762_s10 = sshra.s32 (!%p280_p10), %s529_s21, 4  ;;  %s763_s10 = int_to_ptr.hbm [resolvable:$true] %s762_s10 }
  0x12   : > { %s764_s8 = scalar_lea.hbm (!%p280_p10), %s763_s10, 8  ;;  %p769_p1 = scmp.lt.s32.totalorder (!%p280_p10), %s763_s10, %s1011_s7 }
  0x13   : > { %p765_p12 = scmp.ne.s32.totalorder (!%p280_p10), %s763_s10, %s764_s8 }
  0x14   : > { %v680_v0 = vld [vmem:[%s1005_s1 + $0x8] sm:$0xff]  ;;  %v679_v1 = vld [vmem:[%s1005_s1] sm:$0xff]  ;;  %s323_s19 = scalar_select %p322_p11, %s818_s27, 1  ;;  %vm362_vm0 = vcmask 261120   ;;  %v684_v11 = vld [vmem:[%s1007_s3 + $0x18] sm:$0xff]  ;;  %vm462_vm5 = vcmask 523264  }
  0x15   : > { %372 = vmatpush.bf16.msra.mxu0 %v680_v0  ;;  %v740_v4 = vld [vmem:[%s1006_s2] ss:$0 sm:$0xff]  ;;  %470 = vmatpush.bf16.msra.mxu1 %v684_v11  ;;  %v683_v16 = vld [vmem:[%s1007_s3 + $0x10] sm:$0xff]  ;;  %v682_v19 = vld [vmem:[%s1007_s3 + $0x8] sm:$0xff]  ;;  %p766_p13 = pnand %p765_p12, %p908_p4 }
  0x16   : > { %s647_s20 = sshll.u32 %s323_s19, 3  ;;  %v681_v23 = vld [vmem:[%s1007_s3] sm:$0xff] }
  0x17   : > { %s325_s23 = scalar_lea.vmem %s1004_s0, %s647_s20  ;;  %v741_v52 = vld [vmem:[%s1008_s4] ss:$0 sm:$0xff]  ;;  %p767_p0 = pneg %p766_p13 }
  0x18   : > { %v934_v2 = vld [vmem:[%s325_s23] sm:$0xff]  ;;  %s319_s23 = sand.u32 1, %s810_s25  }
  0x19   : > { %373 = vmatpush.bf16.msra.mxu0 %v679_v1  ;;  %v341_v3 = vpack.c.bf16 %v934_v2, %v934_v2  ;;  %471 = vmatpush.bf16.msra.mxu1 %v683_v16  ;;  %s646_s30 = sshll.u32 %s319_s23, 3  ;;  %s514_s22 = scalar_lea.sflag [#allocation3], %s319_s23 }
  0x1a   : > { %s321_s27 = scalar_lea.vmem [#allocation2], %s646_s30  ;;  %s768_s30 = scalar_lea.hbm %s1011_s7, 16 }
  0x1b   : > { %s526_s20 = sshll.u32 %s321_s27, 4  ;;  %p770_p2 = scmp.lt.s32.totalorder %s768_s30, %s764_s8  ;;  %s527_s20 = int_to_ptr.vmem [resolvable:$true] %s526_s20 }
  0x1c   : > { %656 = vmatmul.msk.bf16.vlgmr.msra.gmra.mxu0 %vm362_vm0, %v341_v3 }
  0x1d   : > { %472 = vmatpush.bf16.msra.mxu1 %v682_v19  ;;  %p771_p3 = por %p770_p2, %p769_p1 }
  0x1f   : > { %p772_p5 = pnand %p771_p3, %p767_p0 }
  0x21   : > { %473 = vmatpush.bf16.msra.mxu1 %v681_v23 }
  0x99   : > { %v375_v5 = vpop.f32.mrf.mxu0 }
  0x9a   : > { %v376_v6 = vadd.f32 %v740_v4, %v375_v5 }
  0x9c   : > { %v380_v7 = vmul.f32 0.70710677, %v376_v6  ;;  %v379_v48 = vmul.f32 0.5, %v376_v6 }
  0x9e   : > { %v381_v8 = vmul.f32 %v380_v7, %v380_v7 }
  0xa0   : > { %v382_v9 = vmin.f32 %v381_v8, 16.0 }
  0xa1   : > { %v377_v10 = vpop.f32.mrf.mxu0 }
  0xa2   : > { %v383_v12 = vmul.f32 2.1237322e-06, %v382_v9  ;;  %v394_v13 = vmul.f32 3.8918573e-05, %v382_v9  ;;  %v742_v10 = vld [vmem:[%s1009_s5] ss:$0 sm:$0xff] }
  0xa4   : > { %v384_v14 = vadd.f32 0.00028619796, %v383_v12  ;;  %v395_v15 = vadd.f32 0.001143296, %v394_v13  ;;  %v743_v13 = vld [vmem:[%s1010_s6] ss:$0 sm:$0xff] }
  0xa6   : > { %v385_v17 = vmul.f32 %v384_v14, %v382_v9  ;;  %v396_v18 = vmul.f32 %v395_v15, %v382_v9 }
  0xa8   : > { %v397_v20 = vadd.f32 0.014752088, %v396_v18  ;;  %v386_v21 = vadd.f32 0.0036580483, %v385_v17 }
  0xaa   : > { %v398_v22 = vmul.f32 %v397_v20, %v382_v9  ;;  %v387_v25 = vmul.f32 %v386_v21, %v382_v9 }
  0xac   : > { %v399_v24 = vadd.f32 0.112945676, %v398_v22  ;;  %v388_v28 = vadd.f32 0.05243302, %v387_v25 }
  0xae   : > { %v400_v26 = vmul.f32 %v399_v24, %v382_v9  ;;  %v389_v31 = vmul.f32 %v388_v28, %v382_v9 }
  0xb0   : > { %v401_v27 = vadd.f32 0.4994258, %v400_v26  ;;  %v390_v32 = vadd.f32 0.18741608, %v389_v31 }
  0xb2   : > { %v402_v29 = vmul.f32 %v401_v27, %v382_v9  ;;  %v391_v34 = vmul.f32 %v390_v32, %v382_v9 }
  0xb4   : > { %v403_v30 = vadd.f32 1.0, %v402_v29  ;;  %v392_v38 = vadd.f32 1.1283791, %v391_v34 }
  0xb6   : > { %744 = vrcp.f32 %v403_v30  ;;  %v415_v37 = vand.u32 2147483648, %v403_v30  ;;  %v413_v40 = vand.u32 2147483647, %v403_v30  ;;  %vm409_vm2 = vweird.f32 %v403_v30 }
  0xb7   : > { %v393_v43 = vmul.f32 %v392_v38, %v380_v7 }
  0xb8   : > { %v416_v42 = vor.u32 1.1754944e-38, %v415_v37  ;;  %vm414_vm4 = vcmp.eq.f32.partialorder %v413_v40, 8.507059e+37 }
  0xbc   : > { %v745_v33 = vpop.eup %744 }
  0xbd   : > { %v405_v35 = vmul.f32 %v745_v33, %v403_v30  ;;  %vm410_vm1 = vweird.f32 %v745_v33 }
  0xbe   : > { %vm411_vm3 = vmor %vm409_vm2, %vm410_vm1 }
  0xbf   : > { %v406_v36 = vsub.f32 1.0, %v405_v35 }
  0xc1   : > { %v407_v39 = vmul.f32 %v745_v33, %v406_v36 }
  0xc3   : > { %v408_v41 = vadd.f32 %v745_v33, %v407_v39 }
  0xc5   : > { %v412_v44 = vsel %vm411_vm3, %v745_v33, %v408_v41 }
  0xc6   : > { %v417_v45 = vsel %vm414_vm4, %v416_v42, %v412_v44 }
  0xc7   : > { %v418_v46 = vmul.f32 %v417_v45, %v393_v43 }
  0xc9   : > { %v657_v47 = vclamps-f32 %v418_v46, 1.0 }
  0xcb   : > { %v421_v49 = vadd.f32 1.0, %v657_v47 }
  0xcd   : > { %v422_v50 = vmul.f32 %v421_v49, %v379_v48 }
  0xcf   : > { %v423_v51 = vpack.c.bf16 %v422_v50, %v422_v50 }
  0xd1   : > { %674 = vmatmul.msk.bf16.vlgmr.msra.gmra.mxu1 %vm462_vm5, %v423_v51 }
 0x14e   : > { %v475_v53 = vpop.f32.mrf.mxu1 }
 0x14f   : > { %v476_v54 = vadd.f32 %v741_v52, %v475_v53 }
 0x151   : > { %v479_v55 = vadd.f32 %v476_v54, %v934_v2 }
 0x153   : > { %v480_v56 = vsel %vm362_vm0, %v479_v55, 0.0  ;;  %v484_v58 = vmul.f32 %v479_v55, %v479_v55 }
 0x154   : > { %481 = vadd.xlane.f32.xlu0 %v480_v56 }
 0x155   : > { %v485_v59 = vsel %vm362_vm0, %v484_v58, 0.0 }
 0x156   : > { %v477_v57 = vpop.f32.mrf.mxu1 }
 0x15c   : > { %486 = vadd.xlane.f32.xlu0 %v485_v59 }
 0x1c7   : > { %v482_v60 = vpop.xlane.xlu0 %481 }
 0x1c8   : > { %v483_v61 = vmul.f32 0.03125, %v482_v60 }
 0x1ca   : > { %v489_v63 = vmul.f32 %v483_v61, %v483_v61  ;;  %v502_v9 = vsub.f32 %v479_v55, %v483_v61 }
 0x1cf   : > { %v487_v62 = vpop.xlane.xlu0 %486 }
 0x1d0   : > { %v488_v0 = vmul.f32 0.03125, %v487_v62 }
 0x1d2   : > { %v490_v1 = vsub.f32 %v488_v0, %v489_v63 }
 0x1d4   : > { %v491_v3 = vadd.f32 1e-05, %v490_v1 }
 0x1d6   : > { %746 = vrsqrt.f32 %v491_v3  ;;  %vm498_vm7 = vweird.f32 %v491_v3 }
 0x1dc   : > { %v747_v4 = vpop.eup %746 }
 0x1dd   : > { %v493_v2 = vmul.f32 %v747_v4, %v491_v3  ;;  %vm499_vm6 = vweird.f32 %v747_v4 }
 0x1de   : > { %vm500_vm8 = vmor %vm498_vm7, %vm499_vm6 }
 0x1df   : > { %v494_v5 = vmul.f32 %v747_v4, %v493_v2 }
 0x1e1   : > { %v495_v6 = vmul.f32 0.5, %v494_v5 }
 0x1e3   : > { %v496_v7 = vsub.f32 1.5, %v495_v6 }
 0x1e5   : > { %v497_v8 = vmul.f32 %v747_v4, %v496_v7 }
 0x1e7   : > { %v501_v11 = vsel %vm500_vm8, %v747_v4, %v497_v8 }
 0x1e8   : > { %v503_v12 = vmul.f32 %v502_v9, %v501_v11 }
 0x1ea   : > { %v507_v14 = vmul.f32 %v742_v10, %v503_v12 }
 0x1ec   : > { %v511_v15 = vadd.f32 %v743_v13, %v507_v14 }
 0x1ee   : > { %512 = vst.msk [vmem:[%s321_s27] sm:$0xff] %vm362_vm0, %v511_v15 }
 0x1ef   : > { %775 = shalt.err (!%p772_p5)
}
 0x1f0   : > { %685 = dma.vmem_to_hbm [thread:$0]  (%p908_p4), %s527_s20, 128, %s529_s21, %s514_s22  }
 0x1f1 PF: > { %p691_p6 = scmp.ge.s32.totalorder %s826_s29, 2  ;;  %s540_s23 = sand.u32 1, %s806_s24  }
 0x1f2   : > { %s541_s18 = scalar_lea.sflag [#allocation3], %s540_s23 }
 0x1f3   : > { %p688_p7 = pnand %p691_p6, %p915_p8 }
 0x1f5   : > { %p689_p9 = pneg %p688_p7 }
 0x1f7   : > { %801 = dma.done.wait (%p689_p9), %s541_s18, 128  }
 0x1f8   : > { %803 = vsyncadd (%p689_p9), %s541_s18, 4294967168  ;;  %s20_s29 = sadd.s32 1, %s826_s29   ;;  %s1014_s24 = smov %s810_s25 }
 0x1f9   : > { %p17_p10 = scmp.ge.s32.totalorder %s20_s29, 4   ;;  %s1015_s25 = smov %s814_s26 }
 0x1fa   : > { %s1016_s26 = smov %s921_s14  ;;  %s1017_s27 = smov %s822_s28 }
 0x1fb   : > { %s1018_s28 = smov %s1020_s9  ;;  %19 = sbr.rel (!%p17_p10) target bundleno = 4 (0x4), region = 92 }
 0x200   :  { %547 = vsyncpa [#allocation3], 1 }
 0x201   :  { %549 = vsyncpa [#allocation3 + $0x1], 1 }

</bundles_post_ra>
